<compile_context>
chip_gen: v7x
topology: tpu7x:2x2x1
jax: 0.10.0
libtpu: 0.0.40
codegen_flags: <defaults>
</compile_context>

<pallas_src>
import functools

import jax
import jax.numpy as jnp
from jax.experimental import pallas as pl
from jax.experimental.pallas import tpu as pltpu


# ---------------------------------------------------------------------------
# Fused kernel: projections (MXU) + rank-1 attention + W conv + BN + residual
# ---------------------------------------------------------------------------
def non_local_kernel(x_ref, wprojT_ref, bproj_ref, wb_ref, o_ref, *, inv_n):
    # x_ref:      (BB, C, S)  input slab (NCHW with HW flattened to S)
    # wprojT_ref: (3, C)      rows = [theta_w, phi_w, g_w]   (1x1 convs, C -> 1)
    # bproj_ref:  (3,)        SMEM scalars [theta_b, phi_b, g_b]
    # wb_ref:     (C, 2)      col0 = bn_scale * W_conv_weight
    #                         col1 = bn_scale * W_conv_bias + bn_shift
    # o_ref:      (BB, C, S)  output slab
    w_out = wb_ref[:, 0:1]                    # (C, 1)
    b_out = wb_ref[:, 1:2]                    # (C, 1)
    theta_b = bproj_ref[0]
    phi_b = bproj_ref[1]
    g_b = bproj_ref[2]

    for b in range(x_ref.shape[0]):           # BB is small and static
        # All three 1x1-conv projections as ONE MXU matmul: (3,C) @ (C,S) -> (3,S)
        pg = jnp.dot(wprojT_ref[...], x_ref[b],
                     preferred_element_type=jnp.float32)
        theta = pg[0:1, :] + theta_b          # (1, S)
        phi = pg[1:2, :] + phi_b              # (1, S)
        g = pg[2:3, :] + g_b                  # (1, S)

        # Attention: (theta @ phi^T / N) @ g == theta * (phi . g) / N
        # (exact reassociation: inter_channels == 1, divide-by-N, no softmax)
        kv = jnp.sum(phi * g, axis=1, keepdims=True)   # (1, 1) cross-lane reduce
        y = theta * (kv * inv_n)                       # (1, S)

        # W branch (1x1 conv 1 -> C with BN folded) + residual.  Re-index x_ref
        # here instead of holding the (C, S) slab live across the projections.
        o_ref[b] = (w_out * y + b_out
                    + x_ref[b].astype(jnp.float32)).astype(o_ref.dtype)


# ---------------------------------------------------------------------------
# Block-size / VMEM-budget selection
# ---------------------------------------------------------------------------
def _pick_batch_block(B, C, S, itemsize, target_bytes=4 << 20):
    """Largest divisor BB of B with block <= target bytes; keep grid >= 2 steps
    (when B >= 2) so the parallel batch axis can shard across v7x's 2 TCs."""
    per_image = max(1, C * S * itemsize)
    best = 1
    for bb in range(1, B + 1):
        if B % bb != 0:
            continue
        if bb * per_image > target_bytes:
            break
        if B >= 2 and (B // bb) < 2:
            continue
        best = bb
    return best


# ---------------------------------------------------------------------------
# Parameter construction (mirrors the module's layers; deterministic)
# ---------------------------------------------------------------------------
def make_params(key, in_channels, randomize_bn=False):
    C = in_channels
    ks = jax.random.split(key, 12)

    def rnd(k, shape, scale=0.1):
        return scale * jax.random.normal(k, shape, dtype=jnp.float32)

    p = {
        # nn.Conv2d(C, 1, 1): weight (1, C, 1, 1) + bias (1,)
        "theta_w": rnd(ks[0], (1, C, 1, 1)), "theta_b": rnd(ks[1], (1,)),
        "phi_w":   rnd(ks[2], (1, C, 1, 1)), "phi_b":   rnd(ks[3], (1,)),
        "g_w":     rnd(ks[4], (1, C, 1, 1)), "g_b":     rnd(ks[5], (1,)),
        # nn.Conv2d(1, C, 1): weight (C, 1, 1, 1) + bias (C,)
        "W_w":     rnd(ks[6], (C, 1, 1, 1)), "W_b":     rnd(ks[7], (C,)),
    }
    if randomize_bn:
        # Non-trivial BN so the numeric check exercises the W branch.
        p.update({
            "bn_gamma": 1.0 + rnd(ks[8], (C,)),
            "bn_beta":  rnd(ks[9], (C,)),
            "bn_mean":  rnd(ks[10], (C,)),
            "bn_var":   1.0 + 0.1 * jnp.abs(jax.random.normal(ks[11], (C,), jnp.float32)),
        })
    else:
        # Faithful to __init__: constant_(W[1].weight, 0), constant_(W[1].bias, 0)
        p.update({
            "bn_gamma": jnp.zeros((C,), jnp.float32),
            "bn_beta":  jnp.zeros((C,), jnp.float32),
            "bn_mean":  jnp.zeros((C,), jnp.float32),
            "bn_var":   jnp.ones((C,), jnp.float32),
        })
    return p


# ---------------------------------------------------------------------------
# Forward pass (NCHW in / NCHW out)
# ---------------------------------------------------------------------------
def non_local_forward(x_nchw, params):
    B, C, H, W = x_nchw.shape
    S = H * W
    x = x_nchw.reshape(B, C, S)                          # free reshape, no transpose
    itemsize = x.dtype.itemsize

    # Projection 1x1-convs packed LANE-DENSE as (3, C) for a single MXU matmul.
    wprojT = jnp.stack([params["theta_w"].reshape(C),
                        params["phi_w"].reshape(C),
                        params["g_w"].reshape(C)], axis=0)             # (3, C)
    bproj = jnp.concatenate([params["theta_b"], params["phi_b"],
                             params["g_b"]]).astype(jnp.float32)       # (3,) -> SMEM

    # BN (inference mode, running stats) folded into the W-conv weight/bias,
    # consolidated into a single (C, 2) block.
    # TODO(synk): training-mode BatchNorm (batch statistics) is not folded here.
    eps = 1e-5
    scale = params["bn_gamma"] / jnp.sqrt(params["bn_var"] + eps)      # (C,)
    shift = params["bn_beta"] - params["bn_mean"] * scale
    w_out = scale * params["W_w"].reshape(C)
    b_out = scale * params["W_b"] + shift
    wb = jnp.stack([w_out, b_out], axis=1)                             # (C, 2)

    # Batch blocking + VMEM budget (generation-safe: fits v7x's 64 MiB physical,
    # explicitly raised above v5e's 16 MiB scoped default when blocks are large).
    BB = _pick_batch_block(B, C, S, itemsize)
    block_bytes = BB * C * S * itemsize
    param_bytes = 2 * (8 * C + 128 * C) * 4        # padded + double-buffered weights
    vmem_limit = int(min(max(4 * block_bytes + param_bytes + (2 << 20), 16 << 20),
                         100 << 20))

    kernel = functools.partial(non_local_kernel, inv_n=1.0 / float(S))

    z = pl.pallas_call(
        kernel,
        out_shape=jax.ShapeDtypeStruct((B, C, S), x.dtype),
        grid_spec=pltpu.PrefetchScalarGridSpec(
            num_scalar_prefetch=0,
            grid=(B // BB,),
            in_specs=[
                pl.BlockSpec((BB, C, S), lambda i: (i, 0, 0)),          # x slab
                pl.BlockSpec((3, C), lambda i: (0, 0)),                 # proj weights
                pl.BlockSpec(memory_space=pltpu.MemorySpace.SMEM),      # proj biases
                pl.BlockSpec((C, 2), lambda i: (0, 0)),                 # folded W w/b
            ],
            out_specs=pl.BlockSpec((BB, C, S), lambda i: (i, 0, 0)),
        ),
        compiler_params=pltpu.CompilerParams(
            dimension_semantics=("parallel",),
            vmem_limit_bytes=vmem_limit),
        # input_output_aliases={0: 0} would be legal here (same shape/dtype) when
        # the caller no longer needs x; left off so x stays valid for the check.
    )(x, wprojT, bproj, wb)

    return z.reshape(B, C, H, W)


# ---------------------------------------------------------------------------
# Pure-JAX reference following the PyTorch forward literally (materializes f)
# ---------------------------------------------------------------------------
def reference_forward(x, params):
    B, C, H, W = x.shape
    S = H * W
    hp = jax.lax.Precision.HIGHEST

    def conv1x1(inp, w, b):
        return (jnp.einsum("bchw,oc->bohw", inp, w[:, :, 0, 0], precision=hp)
                + b.reshape(1, -1, 1, 1))

    g_x = conv1x1(x, params["g_w"], params["g_b"]).reshape(B, 1, S).transpose(0, 2, 1)
    theta_x = conv1x1(x, params["theta_w"], params["theta_b"]).reshape(B, 1, S).transpose(0, 2, 1)
    phi_x = conv1x1(x, params["phi_w"], params["phi_b"]).reshape(B, 1, S)

    f = jnp.matmul(theta_x, phi_x, precision=hp)          # (B, S, S)
    f_div_C = f / S
    y = jnp.matmul(f_div_C, g_x, precision=hp)            # (B, S, 1)
    y = y.transpose(0, 2, 1).reshape(B, 1, H, W)

    W_y = conv1x1(y, params["W_w"], params["W_b"])        # (B, C, H, W)
    eps = 1e-5
    scale = params["bn_gamma"] / jnp.sqrt(params["bn_var"] + eps)
    shift = params["bn_beta"] - params["bn_mean"] * scale
    W_y = W_y * scale.reshape(1, -1, 1, 1) + shift.reshape(1, -1, 1, 1)
    return W_y + x


if __name__ == "__main__":
    key = jax.random.PRNGKey(0)
    kx, kp = jax.random.split(key)

    # Case 1: required small shape.  Case 2: S = 162 (not a 128-multiple) and
    # C = 128 exercises the masked lane-tail stores and a realistic MXU reduce.
    cases = [(2, 4, 16, 16), (2, 128, 9, 18)]
    for (B, C, H, W) in cases:
        x = jax.random.normal(kx, (B, C, H, W), dtype=jnp.float32)
        # Check both the faithful init (BN gamma=beta=0 -> z == x) and randomized
        # BN so the W branch is numerically exercised.
        for randomize_bn in (False, True):
            params = make_params(kp, C, randomize_bn=randomize_bn)
            out = jax.block_until_ready(non_local_forward(x, params))
            ref = jax.block_until_ready(reference_forward(x, params))
            if out.shape != ref.shape:
                raise RuntimeError(f"shape mismatch: {out.shape} vs {ref.shape}")
            if not jnp.allclose(out, ref, atol=1e-4, rtol=1e-4):
                err = float(jnp.max(jnp.abs(out - ref)))
                raise RuntimeError(
                    f"numerical mismatch vs reference (shape {(B, C, H, W)}, "
                    f"randomize_bn={randomize_bn}, max abs err {err})")

    print("KERNEL_OK")
</pallas_src>

<mosaic_0001>
module attributes {stable_mosaic.version = 11 : i64} {
  func.func @non_local_kernel(%arg0: i32, %arg1: memref<1x4x256xf32, #tpu.memory_space<vmem>>, %arg2: memref<3x4xf32, #tpu.memory_space<vmem>>, %arg3: memref<3xf32, #tpu.memory_space<smem>>, %arg4: memref<4x2xf32, #tpu.memory_space<vmem>>, %arg5: memref<1x4x256xf32, #tpu.memory_space<vmem>>) attributes {dimension_semantics = [#tpu.dimension_semantics<parallel>], iteration_bounds = array<i64: 2>, scalar_prefetch = 0 : i64, scratch_operands = 0 : i64, tpu.core_type = #tpu.core_type<tc>, window_params = [{transform_indices = @transform_0, window_bounds = array<i64: 1, 4, 256>}, {pipeline_mode = #tpu.pipeline_mode<synchronous>, transform_indices = @transform_1, window_bounds = array<i64: 3, 4>}, {transform_indices = @transform_2, window_bounds = array<i64: 3>}, {pipeline_mode = #tpu.pipeline_mode<synchronous>, transform_indices = @transform_3, window_bounds = array<i64: 4, 2>}, {transform_indices = @transform_4, window_bounds = array<i64: 1, 4, 256>}]} {
    %c0 = arith.constant 0 : index
    %c0_0 = arith.constant 0 : index
    %0 = vector.load %arg4[%c0, %c0_0] : memref<4x2xf32, #tpu.memory_space<vmem>>, vector<4x1xf32>
    %c0_1 = arith.constant 0 : index
    %c1 = arith.constant 1 : index
    %1 = vector.load %arg4[%c0_1, %c1] : memref<4x2xf32, #tpu.memory_space<vmem>>, vector<4x1xf32>
    %c0_2 = arith.constant 0 : index
    %2 = memref.load %arg3[%c0_2] : memref<3xf32, #tpu.memory_space<smem>>
    %c1_3 = arith.constant 1 : index
    %3 = memref.load %arg3[%c1_3] : memref<3xf32, #tpu.memory_space<smem>>
    %c2 = arith.constant 2 : index
    %4 = memref.load %arg3[%c2] : memref<3xf32, #tpu.memory_space<smem>>
    %c0_4 = arith.constant 0 : index
    %c0_5 = arith.constant 0 : index
    %5 = vector.load %arg2[%c0_4, %c0_5] : memref<3x4xf32, #tpu.memory_space<vmem>>, vector<3x4xf32>
    %c0_6 = arith.constant 0 : index
    %c0_7 = arith.constant 0 : index
    %c0_8 = arith.constant 0 : index
    %6 = vector.load %arg1[%c0_6, %c0_7, %c0_8] : memref<1x4x256xf32, #tpu.memory_space<vmem>>, vector<1x4x256xf32>
    %7 = vector.shape_cast %6 : vector<1x4x256xf32> to vector<4x256xf32>
    %cst = arith.constant dense<0.000000e+00> : vector<3x256xf32>
    %8 = tpu.matmul %5, %7, %cst {dimension_numbers = #tpu.dot_dimension_numbers<[1], [0], [0], [1], [0, 0, 1, 1], [], []>} : vector<3x4xf32>, vector<4x256xf32>, vector<3x256xf32> -> vector<3x256xf32>
    %9 = vector.extract_strided_slice %8 {offsets = [0, 0], sizes = [1, 256], strides = [1, 1]} : vector<3x256xf32> to vector<1x256xf32>
    %10 = vector.broadcast %2 : f32 to vector<1x256xf32>
    %11 = arith.addf %9, %10 : vector<1x256xf32>
    %12 = vector.extract_strided_slice %8 {offsets = [1, 0], sizes = [1, 256], strides = [1, 1]} : vector<3x256xf32> to vector<1x256xf32>
    %13 = vector.broadcast %3 : f32 to vector<1x256xf32>
    %14 = arith.addf %12, %13 : vector<1x256xf32>
    %15 = vector.extract_strided_slice %8 {offsets = [2, 0], sizes = [1, 256], strides = [1, 1]} : vector<3x256xf32> to vector<1x256xf32>
    %16 = vector.broadcast %4 : f32 to vector<1x256xf32>
    %17 = arith.addf %15, %16 : vector<1x256xf32>
    %18 = arith.mulf %14, %17 : vector<1x256xf32>
    %cst_9 = arith.constant dense<0.000000e+00> : vector<1xf32>
    %19 = vector.multi_reduction <add>, %18, %cst_9 [1] : vector<1x256xf32> to vector<1xf32>
    %20 = vector.shape_cast %19 : vector<1xf32> to vector<1x1xf32>
    %cst_10 = arith.constant 3.906250e-03 : f32
    %21 = vector.broadcast %cst_10 : f32 to vector<1x1xf32>
    %22 = arith.mulf %20, %21 : vector<1x1xf32>
    %23 = vector.broadcast %22 : vector<1x1xf32> to vector<1x256xf32>
    %24 = arith.mulf %11, %23 : vector<1x256xf32>
    %25 = vector.broadcast %0 : vector<4x1xf32> to vector<4x256xf32>
    %26 = vector.broadcast %24 : vector<1x256xf32> to vector<4x256xf32>
    %27 = arith.mulf %25, %26 : vector<4x256xf32>
    %28 = vector.broadcast %1 : vector<4x1xf32> to vector<4x256xf32>
    %29 = arith.addf %27, %28 : vector<4x256xf32>
    %c0_11 = arith.constant 0 : index
    %c0_12 = arith.constant 0 : index
    %c0_13 = arith.constant 0 : index
    %30 = vector.load %arg1[%c0_11, %c0_12, %c0_13] : memref<1x4x256xf32, #tpu.memory_space<vmem>>, vector<1x4x256xf32>
    %31 = vector.shape_cast %30 : vector<1x4x256xf32> to vector<4x256xf32>
    %32 = arith.addf %29, %31 : vector<4x256xf32>
    %c0_14 = arith.constant 0 : index
    %c0_15 = arith.constant 0 : index
    %c0_16 = arith.constant 0 : index
    %33 = vector.load %arg5[%c0_14, %c0_15, %c0_16] : memref<1x4x256xf32, #tpu.memory_space<vmem>>, vector<1x4x256xf32>
    %34 = vector.shape_cast %33 : vector<1x4x256xf32> to vector<4x256xf32>
    %35 = vector.shape_cast %32 : vector<4x256xf32> to vector<1x4x256xf32>
    tpu.vector_store %arg5[%c0_14, %c0_15, %c0_16], %35 {strides = array<i32>} : memref<1x4x256xf32, #tpu.memory_space<vmem>>, vector<1x4x256xf32>,
    return
  }
  func.func @transform_0(%arg0: i32) -> (i32, i32, i32) {
    %c0_i32 = arith.constant 0 : i32
    %c0_i32_0 = arith.constant 0 : i32
    %c0_i32_1 = arith.constant 0 : i32
    return %arg0, %c0_i32, %c0_i32_0 : i32, i32, i32
  }
  func.func @transform_1(%arg0: i32) -> (i32, i32) {
    %c0_i32 = arith.constant 0 : i32
    %c0_i32_0 = arith.constant 0 : i32
    %c0_i32_1 = arith.constant 0 : i32
    return %c0_i32, %c0_i32_0 : i32, i32
  }
  func.func @transform_2(%arg0: i32) -> i32 {
    %c0_i32 = arith.constant 0 : i32
    %c0_i32_0 = arith.constant 0 : i32
    return %c0_i32 : i32
  }
  func.func @transform_3(%arg0: i32) -> (i32, i32) {
    %c0_i32 = arith.constant 0 : i32
    %c0_i32_0 = arith.constant 0 : i32
    %c0_i32_1 = arith.constant 0 : i32
    return %c0_i32, %c0_i32_0 : i32, i32
  }
  func.func @transform_4(%arg0: i32) -> (i32, i32, i32) {
    %c0_i32 = arith.constant 0 : i32
    %c0_i32_0 = arith.constant 0 : i32
    %c0_i32_1 = arith.constant 0 : i32
    return %arg0, %c0_i32, %c0_i32_0 : i32, i32, i32
  }
}

</mosaic_0001>

<bundles_post_ra>
// kernel: tpu_custom_call.1
= control target key start
LH: loop header
LB: loop body
LE: loop exit
PB: predicated region body
PF: predicated region fallthrough
CT: control target
= control target key end

     0   :  { %9 = vsyncpa [#allocation3], 0  ;;  %s908_s0 = inlined_call_operand.hbm [shape: f32[2,4,256], index: 0, kind: input, shape index: {}]   ;;  %s909_s1 = inlined_call_operand.vmem [shape: f32[3,4], index: 1, kind: input, shape index: {}]   ;;  %s910_s2 = inlined_call_operand.vmem [shape: f32[3], index: 2, kind: input, shape index: {}]   ;;  %s911_s3 = inlined_call_operand.vmem [shape: f32[4,2], index: 3, kind: input, shape index: {}]   ;;  %s912_s4 = inlined_call_operand.hbm [shape: f32[2,4,256], index: 4, kind: output, shape index: {}]  }
   0x1   :  { %11 = vsyncpa [#allocation3 + $0x1], 0 }
   0x2   :  { %12 = vsyncpa [#allocation5], 0 }
   0x3   :  { %13 = vsyncpa [#allocation4], 0 }
   0x4   :  { %15 = vsyncpa [#allocation4 + $0x1], 0  ;;  %s706_s15 = smov 0   ;;  %s708_s16 = smov 0  }
   0x5   :  { %s710_s17 = smov 0   ;;  %s712_s18 = smov 0  }
   0x6 LB: > { %s727_s19 = sadd.s32 4294967295, %s673_s18   ;;  %s471_s20 = sadd.s32 4294967294, %s673_s18   ;;  %s673_s18 = sphi %s712_s18, %s933_s18   ;;  %s669_s17 = sphi %s710_s17, %s932_s17   ;;  %s665_s16 = sphi %s708_s16, %s931_s16   ;;  %s661_s15 = sphi %s706_s15, %s930_s15  }
   0x7   : > { %p41_p0 = scmp.ne.s32.totalorder %s665_s16, %s661_s15  ;;  %p913_p1 = scmp.eq.s32.totalorder %s727_s19, 0 }
   0x8   : > { %p134_p3 = scmp.eq.s32.totalorder %s471_s20, 1  ;;  %p472_p5 = scmp.ge.s32.totalorder %s673_s18, 1 }
   0x9   : > { %p736_p4 = por %p913_p1, %p41_p0  ;;  %p141_p7 = scmp.lt.s32.totalorder %s673_s18, 3 }
   0xa   : > { %p741_p6 = por %p134_p3, %p41_p0  ;;  %s157_s25 = sshll.u32 %s910_s2, 4  ;;  %s158_s25 = int_to_ptr.vmem [resolvable:$true] %s157_s25 }
   0xb   : > { %s916_s21 = scalar_select %p736_p4, 1, 0 }
   0xc   : > { %s917_s22 = scalar_select %p741_p6, 1, 0 }
   0xd   : > { %p749_p8 = pnand %p472_p5, %p141_p7  ;;  %s757_s27 = sadd.s32 1, %s673_s18  }
   0xe   : > { %s25_s29 = ssub.s32 %s673_s18, %s757_s27  ;;  %s28_s5 = sadd.s32 1, %s669_s17 }
   0xf   : > { %p502_p10 = pneg %p749_p8  ;;  %p767_p12 = scmp.eq.s32.totalorder %s25_s29, 0 }
  0x10   : > { %p35_p13 = scmp.ne.s32.totalorder %s669_s17, %s665_s16  ;;  %s558_s6 = scalar_lea.vmem %s158_s25, 16 }
  0x11   : > { %p761_p11 = pnand %p502_p10, %p913_p1  ;;  %p559_p0 = scmp.ne.s32.totalorder %s158_s25, %s558_s6 }
  0x12   : > { %p566_p9 = scmp.lt.s32.totalorder %s158_s25, %s158_s25  ;;  %p567_p2 = scmp.lt.s32.totalorder %s558_s6, %s558_s6 }
  0x13   : > { %p560_p3 = pneg %p761_p11 }
  0x14   : > { %p568_p10 = por %p567_p2, %p566_p9 }
  0x15   : > { %p561_p5 = pnand %p560_p3, %p559_p0 }
  0x17   : > { %p562_p7 = pneg %p561_p5 }
  0x19   : > { %p569_p1 = pnand %p568_p10, %p562_p7 }
  0x1b   : > { %572 = shalt.err (!%p569_p1)
}
  0x1c   : > { %s675_s7 = smov [#allocation6]   ;;  %p36_p2 = scmp.eq.s32.totalorder %s673_s18, 0 }
  0x1d   : > { %505 = dma.vmem_to_smem (!%p761_p11), %s158_s25, 16, %s675_s7, [#allocation5]  }
  0x1e   : > { %s781_s8 = scalar_select %p767_p12, %s669_s17, %s28_s5  }
  0x1f   : > { %p921_p1 = scmp.eq.s32.totalorder %s727_s19, 1  ;;  %p515_p0 = scmp.lt.s32.totalorder %s673_s18, 2 }
  0x20   : > { %s171_s10 = sand.u32 1, %s669_s17   ;;  %p37_p3 = por %p36_p2, %p35_p13 }
  0x21   : > { %p789_p9 = por %p921_p1, %p35_p13  ;;  %s475_s11 = sshll.u32 %s171_s10, 3 }
  0x22   : > { %s492_s12 = sshll.u32 %s673_s18, 7  ;;  %s175_s23 = scalar_lea.vmem [#allocation2], %s475_s11 }
  0x23   : > { %s922_s9 = scalar_select %p789_p9, 1, 0 }
  0x24   : > { %s802_s20 = scalar_lea.hbm %s908_s0, %s492_s12  ;;  %s183_s24 = sshll.u32 %s175_s23, 4  ;;  %s808_s24 = int_to_ptr.vmem [resolvable:$true] %s183_s24 }
  0x25   : > { %p804_p11 = pnand %p515_p0, %p37_p3  ;;  %s172_s28 = scalar_lea.sflag [#allocation3], %s171_s10 }
  0x26   : > { %s573_s29 = scalar_lea.hbm %s802_s20, 128  ;;  %s578_s6 = scalar_lea.hbm %s908_s0, 256 }
  0x27   : > { %p574_p12 = scmp.ne.s32.totalorder %s802_s20, %s573_s29  ;;  %p575_p13 = pneg %p804_p11 }
  0x28   : > { %p579_p10 = scmp.lt.u32.totalorder %s802_s20, %s908_s0  ;;  %p580_p2 = scmp.lt.u32.totalorder %s578_s6, %s573_s29 }
  0x29   : > { %p576_p5 = pnand %p575_p13, %p574_p12  ;;  %p582_p0 = scmp.lt.u32.totalorder %s573_s29, %s802_s20 }
  0x2a   : > { %p581_p1 = por %p580_p2, %p579_p10 }
  0x2b   : > { %p577_p7 = pneg %p576_p5 }
  0x2c   : > { %p583_p3 = por %p582_p0, %p581_p1 }
  0x2e   : > { %p584_p6 = pnand %p583_p3, %p577_p7 }
  0x30   : > { %587 = shalt.err (!%p584_p6)
}
  0x31   : > { %s588_s10 = scalar_lea.vmem %s808_s24, 128  ;;  %s676_s12 = smov [#allocation2]  }
  0x32   : > { %p589_p12 = scmp.ne.s32.totalorder %s808_s24, %s588_s10  ;;  %s593_s13 = sshll.u32 %s676_s12, 4  ;;  %s594_s13 = int_to_ptr.vmem [resolvable:$false] %s593_s13 }
  0x33   : > { %s595_s14 = scalar_lea.vmem %s594_s13, 256  ;;  %p596_p4 = scmp.lt.s32.totalorder %s808_s24, %s594_s13 }
  0x34   : > { %p591_p5 = pnand %p589_p12, %p575_p13  ;;  %p597_p10 = scmp.lt.s32.totalorder %s595_s14, %s588_s10 }
  0x36   : > { %p592_p9 = pneg %p591_p5  ;;  %p598_p2 = por %p597_p10, %p596_p4 }
  0x38   : > { %p599_p1 = pnand %p598_p2, %p592_p9 }
  0x3a   : > { %602 = shalt.err (!%p599_p1)
}
  0x3b   : > { %509 = dma.hbm_to_vmem [thread:$0]  (!%p804_p11), %s802_s20, 128, %s808_s24, %s172_s28  }
  0x3c   : > { %192 = sbr.rel (%p749_p8) target bundleno = 473 (0x1d9), region = 36  ;;  %s838_s23 = sand.u32 (!%p749_p8), 1, %s665_s16  }
  0x3d   : > { %s479_s29 = sshll.u32 (!%p749_p8), %s838_s23, 3  ;;  %s195_s30 = scalar_lea.sflag (!%p749_p8), [#allocation3], %s838_s23 }
  0x3e   : > { %s198_s5 = scalar_lea.vmem (!%p749_p8), [#allocation2], %s479_s29  ;;  %p924_p4 = scmp.ne.s32.totalorder (!%p749_p8), %s916_s21, 0 }
  0x43   : > { %648 = dma.done.wait (%p924_p4), %s195_s30, 128  }
  0x44   : > { %650 = vsyncadd (%p924_p4), %s195_s30, 4294967168  ;;  %p925_p6 = scmp.eq.s32.totalorder %s727_s19, 0 }
  0x46   : > { %652 = dma.done.wait (%p925_p6), [#allocation5], 16   ;;  %p926_p8 = pmov %p925_p6 }
  0x48   : > { %654 = vsyncadd (%p926_p8), [#allocation5], 4294967280 }
  0x49   : > { %207 = sfence }
  0x4a   : > { %v233_v0 = vld [vmem:[%s198_s5] sm:$0xff]  ;;  %vm240_vm0 = vcmask 1043456   ;;  %v677_v2 = vmov 0.0   ;;  %vm236_vm1 = vcmask 31744   ;;  %v678_v4 = vmov 0   ;;  %s483_s25 = sld [smem:[#allocation6 + $0x2]] }
  0x4b   : > { %v235_v1 = vcombine.high %v233_v0, %v233_v0  ;;  %309 = vmatprep.mubr.f32.mxu0 %v677_v2  ;;  %v232_v3 = vld [vmem:[%s909_s1] sm:$0x7]  ;;  %554 = vset.pattern.permute.xlu0 %v678_v4  ;;  %v679_v6 = vmov 1   ;;  %s482_s28 = sld [smem:[#allocation6 + $0x1]]  ;;  %vm333_vm2 = vcmask 1041409   ;;  %s229_s6 = sld [smem:[#allocation6]]  ;;  %v350_v22 = vlaneseq }
  0x4c   : > { %v228_v5 = vld [vmem:[%s911_s3] sm:$0xf]  ;;  %555 = vset.pattern.permute.xlu1 %v679_v6  ;;  %s493_s7 = sshll.u32 %s727_s19, 7  ;;  %s227_s11 = scalar_lea.vmem [#allocation7], %s479_s29 }
  0x4d   : > { %484 = vmatprep.subr.msk.mxu0 %vm240_vm0, %v235_v1  ;;  %361 = vperm.xlu1 %555, %v228_v5   ;;  %v351_v23 = vshrl.u32 %v350_v22, 7  ;;  %s389_s10 = sshll.u32 %s227_s11, 4  ;;  %s864_s14 = scalar_lea.hbm %s912_s4, %s493_s7  ;;  %s866_s10 = int_to_ptr.vmem [resolvable:$true] %s389_s10 }
  0x4e   : > { %485 = vmatpush1.msk.msra.mxu0 %vm240_vm0, %v233_v0  ;;  %s375_s30 = scalar_lea.sflag [#allocation4], %s838_s23  ;;  %s603_s5 = scalar_lea.vmem %s866_s10, 128 }
  0x4f   : > { %486 = vmatmul.mubr.msk.f32.vlgmr.msra.gmra.mrb[0].mxu0 %vm236_vm1, %v232_v3  ;;  %v352_v30 = vsub.s32 0, %v351_v23  ;;  %p604_p9 = scmp.ne.s32.totalorder %s866_s10, %s603_s5  ;;  %p927_p11 = scmp.ne.s32.totalorder %s922_s9, 0 }
  0x50   : > { %v322_v7 = vstv %s483_s25  ;;  %s680_s19 = smov [#allocation7]  }
  0x51   : > { %v319_v9 = vstv %s482_s28  ;;  %v316_v24 = vstv %s229_s6  ;;  %p605_p13 = pnand %p604_p9, %p927_p11  ;;  %s607_s29 = sshll.u32 %s680_s19, 4  ;;  %s608_s29 = int_to_ptr.vmem [resolvable:$false] %s607_s29 }
  0x52   : > { %s609_s26 = scalar_lea.vmem %s608_s29, 256  ;;  %p610_p0 = scmp.lt.s32.totalorder %s866_s10, %s608_s29 }
  0x53   : > { %p606_p7 = pneg %p605_p13  ;;  %p611_p3 = scmp.lt.s32.totalorder %s609_s26, %s603_s5 }
  0x55   : > { %p612_p12 = por %p611_p3, %p610_p0 }
  0x57   : > { %p613_p5 = pnand %p612_p12, %p606_p7 }
  0xcc   : > { %v362_v36 = vpop.permute.xlu1 %361 }
 0x122   : > { %v311_v8 = vpop.f32.mrb[0].mxu0 }
 0x123   : > { %v313_v10 = vpop.f32.mrb[1].mxu0  ;;  %v323_v11 = vadd.f32 %v322_v7, %v311_v8  ;;  %v320_v13 = vadd.f32 %v319_v9, %v311_v8  ;;  %v317_v27 = vadd.f32 %v316_v24, %v311_v8 }
 0x124   : > { %v324_v12 = vadd.f32 %v322_v7, %v313_v10  ;;  %v321_v15 = vadd.f32 %v319_v9, %v313_v10  ;;  %v318_v28 = vadd.f32 %v316_v24, %v313_v10 }
 0x125   : > { %v327_v14 = vrot.slane %v323_v11, 1 }
 0x126   : > { %v328_v16 = vrot.slane %v324_v12, 1 }
 0x127   : > { %v331_v17 = vmul.f32 %v327_v14, %v320_v13 }
 0x128   : > { %v332_v18 = vmul.f32 %v328_v16, %v321_v15 }
 0x129   : > { %v334_v19 = vsel %vm333_vm2, %v331_v17, 0.0 }
 0x12a   : > { %v335_v20 = vsel %vm333_vm2, %v332_v18, 0.0 }
 0x12b   : > { %v336_v21 = vadd.f32 %v335_v20, %v334_v19 }
 0x12d   : > { %337 = vadd.xlane.f32.xlu0 %v336_v21 }
 0x143   : > { %347 = vperm.xlu0 %554, %v228_v5  }
 0x147   : > { %556 = vset.pattern.permute.xlu0 %v679_v6 }
 0x1ba   : > { %v338_v25 = vpop.xlane.xlu0 %337 }
 0x1bb   : > { %v339_v26 = vmul.f32 0.00390625, %v338_v25 }
 0x1bd   : > { %v341_v29 = vrot.slane %v339_v26, 1 }
 0x1bf   : > { %v343_v31 = vmul.f32 %v341_v29, %v317_v27  ;;  %v344_v32 = vmul.f32 %v341_v29, %v318_v28 }
 0x1c1   : > { %v353_v33 = vrot.slane %v343_v31, %v352_v30  ;;  %v357_v34 = vrot.slane %v344_v32, %v352_v30 }
 0x1c2   : > { %v348_v35 = vpop.permute.xlu0 %347 }
 0x1c3   : > { %v358_v37 = vmul.f32 %v353_v33, %v348_v35  ;;  %v359_v38 = vmul.f32 %v357_v34, %v348_v35 }
 0x1c5   : > { %v364_v39 = vadd.f32 %v362_v36, %v358_v37  ;;  %v365_v40 = vadd.f32 %v362_v36, %v359_v38 }
 0x1c7   : > { %v367_v41 = vadd.f32 %v364_v39, %v233_v0  ;;  %v368_v42 = vadd.f32 %v365_v40, %v235_v1 }
 0x1c9   : > { %v371_v43 = vcombine.low %v367_v41, %v368_v42 }
 0x1cb   : > { %373 = vst [vmem:[%s227_s11] sm:$0xff] %v371_v43 }
 0x1cc   : > { %616 = shalt.err (!%p613_p5)
}
 0x1cd   : > { %s617_s23 = scalar_lea.hbm %s864_s14, 128  ;;  %s621_s24 = scalar_lea.hbm %s912_s4, 256 }
 0x1ce   : > { %p618_p10 = scmp.ne.s32.totalorder %s864_s14, %s617_s23  ;;  %p622_p4 = scmp.lt.u32.totalorder %s864_s14, %s912_s4 }
 0x1cf   : > { %p623_p6 = scmp.lt.u32.totalorder %s621_s24, %s617_s23  ;;  %p625_p9 = scmp.lt.u32.totalorder %s617_s23, %s864_s14 }
 0x1d0   : > { %p619_p2 = pnand %p618_p10, %p927_p11 }
 0x1d1   : > { %p624_p8 = por %p623_p6, %p622_p4 }
 0x1d2   : > { %p620_p1 = pneg %p619_p2 }
 0x1d3   : > { %p626_p13 = por %p625_p9, %p624_p8 }
 0x1d5   : > { %p627_p7 = pnand %p626_p13, %p620_p1 }
 0x1d7   : > { %630 = shalt.err (!%p627_p7)
}
 0x1d8   : > { %500 = dma.vmem_to_hbm [thread:$0]  (%p927_p11), %s866_s10, 128, %s864_s14, %s375_s30  }
 0x1d9 PF: > { %s401_s6 = sand.u32 1, %s661_s15   ;;  %p928_p0 = scmp.ne.s32.totalorder %s917_s22, 0 }
 0x1da   : > { %p929_p3 = scmp.ge.s32.totalorder %s673_s18, 2  ;;  %s402_s7 = scalar_lea.sflag [#allocation4], %s401_s6 }
 0x1dc   : > { %p511_p12 = pnand %p929_p3, %p928_p0 }
 0x1de   : > { %656 = dma.done.wait (!%p511_p12), %s402_s7, 128  }
 0x1df   : > { %658 = vsyncadd (!%p511_p12), %s402_s7, 4294967168  ;;  %p18_p5 = scmp.ge.s32.totalorder %s757_s27, 4   ;;  %s930_s15 = smov %s665_s16 }
 0x1e0   : > { %s931_s16 = smov %s669_s17  ;;  %s932_s17 = smov %s781_s8 }
 0x1e1   : > { %s933_s18 = smov %s757_s27  ;;  %20 = sbr.rel (!%p18_p5) target bundleno = 6 (0x6), region = 86 }
 0x1e8   :  { %407 = vsyncpa [#allocation3], 1 }
 0x1e9   :  { %409 = vsyncpa [#allocation3 + $0x1], 1 }
 0x1ea   :  { %410 = vsyncpa [#allocation4], 1 }
 0x1eb   :  { %412 = vsyncpa [#allocation4 + $0x1], 1 }
 0x1ec   :  { %413 = vsyncpa [#allocation5], 1 }
 0x1ed   :  { %415 = vsyncpa [#allocation5 + $0x1], 1 }

</bundles_post_ra>
